<compile_context>
chip_gen: v7x
topology: tpu7x:2x2x1
jax: 0.10.0
libtpu: 0.0.40
codegen_flags: <defaults>
</compile_context>

<pallas_src>
import functools

import jax
import jax.numpy as jnp
import numpy as np
from jax import lax
from jax.experimental import pallas as pl
from jax.experimental.pallas import tpu as pltpu


# ------------- fused conv3x3 (+ optional input affine) + BN partial stats -------------

def _conv_bn_stats_kernel(W, fuse_affine, *args):
    """One batch element: 3x3 'same' conv as a single MXU matmul, plus per-image
    BatchNorm partial statistics (sum and centered sum-of-squares).

    Activations are laid out (C, H*W) with H*W on the lane axis (lane-dense)."""
    if fuse_affine:
        (x_ref, scale_ref, shift_ref, mask_ref, w_ref,
         y_ref, s_ref, q_ref, xs_ref) = args
    else:
        (x_ref, mask_ref, w_ref, y_ref, s_ref, q_ref, xs_ref) = args
        scale_ref = shift_ref = None

    cin = x_ref.shape[1]
    HW = x_ref.shape[2]

    x = x_ref[0]                                            # (cin, HW) f32
    if fuse_affine:
        # Previous layer's BatchNorm affine, applied on the fly (no extra HBM pass).
        x = x * scale_ref[...] + shift_ref[...]

    # Build the transposed im2col operand (9*cin, HW) in VMEM scratch:
    # tap t=(ky,kx) is a lane rotation of x by -(oy*W+ox) with a zero edge mask
    # (the mask reproduces the 'same' zero padding, including the row wraparound
    # introduced by rotating the flattened H*W axis).
    t = 0
    for oy in (-1, 0, 1):
        for ox in (-1, 0, 1):
            off = oy * W + ox                               # static Python int
            shifted = x if off == 0 else pltpu.roll(x, shift=(-off) % HW, axis=1)
            xs_ref[pl.ds(t * cin, cin), :] = shifted * mask_ref[t]
            t += 1

    # Single matmul, K = 9*cin, lane-dense N = HW.  (Bias intentionally absent.)
    y = jnp.dot(w_ref[...], xs_ref[...], preferred_element_type=jnp.float32)
    y_ref[0] = y                                            # (cout, HW)

    # Per-image partial BatchNorm statistics (centered -> stable pooled combine).
    s = jnp.sum(y, axis=1, keepdims=True)                   # (cout, 1)
    m = s * (1.0 / HW)
    d = y - m
    s_ref[0] = s
    q_ref[0] = jnp.sum(d * d, axis=1, keepdims=True)


def _fused_conv_bn_stats(x, w_oihw, masks, W, scale=None, shift=None):
    """x: (N, C_in, H*W) f32, w_oihw: (C_out, C_in, 3, 3), masks: (9, 1, H*W).
    Optionally applies a per-channel affine (previous BN) to x on the fly.
    Returns (conv output (N, C_out, H*W), per-image sum (N, C_out, 1),
             per-image centered sum-of-squares (N, C_out, 1))."""
    N, cin, HW = x.shape
    cout = w_oihw.shape[0]
    # Tap-major weight layout: w2d[o, t*cin + i] = w[o, i, ky, kx], t = ky*3 + kx.
    w2d = jnp.transpose(w_oihw, (0, 2, 3, 1)).reshape(cout, 9 * cin).astype(jnp.float32)

    fuse = scale is not None
    kern = functools.partial(_conv_bn_stats_kernel, W, fuse)

    in_specs = [pl.BlockSpec((1, cin, HW), lambda n: (n, 0, 0))]
    inputs = [x]
    if fuse:
        in_specs += [pl.BlockSpec((cin, 1), lambda n: (0, 0)),
                     pl.BlockSpec((cin, 1), lambda n: (0, 0))]
        inputs += [scale, shift]
    in_specs += [pl.BlockSpec((9, 1, HW), lambda n: (0, 0, 0)),
                 pl.BlockSpec((cout, 9 * cin), lambda n: (0, 0))]
    inputs += [masks, w2d]

    y, s, q = pl.pallas_call(
        kern,
        out_shape=(jax.ShapeDtypeStruct((N, cout, HW), jnp.float32),
                   jax.ShapeDtypeStruct((N, cout, 1), jnp.float32),
                   jax.ShapeDtypeStruct((N, cout, 1), jnp.float32)),
        grid_spec=pltpu.PrefetchScalarGridSpec(
            num_scalar_prefetch=0,
            grid=(N,),
            in_specs=in_specs,
            out_specs=(pl.BlockSpec((1, cout, HW), lambda n: (n, 0, 0)),
                       pl.BlockSpec((1, cout, 1), lambda n: (n, 0, 0)),
                       pl.BlockSpec((1, cout, 1), lambda n: (n, 0, 0))),
            scratch_shapes=[pltpu.VMEM((9 * cin, HW), jnp.float32)]),
        compiler_params=pltpu.CompilerParams(
            dimension_semantics=("parallel",)),
    )(*inputs)
    return y, s, q


# --------------------------- final BN affine (lane-dense) ------------------------------

def _affine_kernel(x_ref, scale_ref, shift_ref, o_ref):
    o_ref[...] = x_ref[...] * scale_ref[...] + shift_ref[...]


def _channel_affine(y, scale, shift):
    N, C, HW = y.shape
    # Largest lane tile that divides HW (keeps stores unmasked / lane-dense).
    lt = next((t for t in (512, 256, 128) if HW % t == 0), HW)
    return pl.pallas_call(
        _affine_kernel,
        out_shape=jax.ShapeDtypeStruct((N, C, HW), jnp.float32),
        grid_spec=pltpu.PrefetchScalarGridSpec(
            num_scalar_prefetch=0,
            grid=(N, HW // lt),
            in_specs=[pl.BlockSpec((1, C, lt), lambda n, j: (n, 0, j)),
                      pl.BlockSpec((C, 1), lambda n, j: (0, 0)),
                      pl.BlockSpec((C, 1), lambda n, j: (0, 0))],
            out_specs=pl.BlockSpec((1, C, lt), lambda n, j: (n, 0, j)),
        ),
        compiler_params=pltpu.CompilerParams(
            dimension_semantics=("parallel", "parallel")),
    )(y, scale, shift)


# ------------------------------- small host-side math ----------------------------------

def _tap_masks(H, W):
    """(9, 1, H*W) float mask: 1 where the 3x3 tap's source pixel is inside the image."""
    m = np.zeros((9, 1, H, W), np.float32)
    t = 0
    for oy in (-1, 0, 1):
        for ox in (-1, 0, 1):
            r0, r1 = max(0, -oy), min(H, H - oy)
            c0, c1 = max(0, -ox), min(W, W - ox)
            m[t, 0, r0:r1, c0:c1] = 1.0
            t += 1
    return jnp.asarray(m.reshape(9, 1, H * W))


def _bn_scale_shift(s, q, count_per_image, gamma, beta, eps=1e-5):
    """Combine per-image centered partial stats (pooled-variance formula) into the
    BatchNorm scale/shift (biased variance, training-mode semantics)."""
    total = s.shape[0] * count_per_image
    mean = jnp.sum(s, axis=0) / total                             # (C, 1)
    m_img = s / count_per_image                                   # (N, C, 1)
    var = (jnp.sum(q, axis=0)
           + count_per_image * jnp.sum((m_img - mean) ** 2, axis=0)) / total
    scale = gamma[:, None] * lax.rsqrt(var + eps)                 # (C, 1)
    shift = beta[:, None] - mean * scale
    return scale, shift


# ---------------------------------- module forward -------------------------------------

def conv_block_forward(x_nchw, params, eps=1e-5):
    N, cin, H, W = x_nchw.shape
    cout = params["w1"].shape[0]
    HW = H * W

    x = x_nchw.reshape(N, cin, HW).astype(jnp.float32)    # free reshape; stays NCHW
    masks = _tap_masks(H, W)

    # Conv1 + fused BN1 partial stats.  Conv biases are dropped: training-mode BN
    # subtracts the batch mean, so a per-channel constant bias cancels exactly.
    y1, s1, q1 = _fused_conv_bn_stats(x, params["w1"], masks, W)
    scale1, shift1 = _bn_scale_shift(s1, q1, HW, params["g1"], params["be1"], eps)

    # BN1 affine applied on the fly while conv2 reads its input; conv2 + BN2 stats.
    y2, s2, q2 = _fused_conv_bn_stats(y1, params["w2"], masks, W,
                                      scale=scale1, shift=shift1)
    scale2, shift2 = _bn_scale_shift(s2, q2, HW, params["g2"], params["be2"], eps)

    out = _channel_affine(y2, scale2, shift2)
    return out.reshape(N, cout, H, W)                      # free reshape; NCHW output


# --------------------------------- pure-JAX reference ----------------------------------

def ref_forward(x, params, eps=1e-5):
    def conv(x, w, b):
        y = lax.conv_general_dilated(
            x, w, (1, 1), "SAME",
            dimension_numbers=("NCHW", "OIHW", "NCHW"),
            precision=lax.Precision.HIGHEST)
        return y + b[None, :, None, None]

    def bn(x, g, be):
        mean = jnp.mean(x, axis=(0, 2, 3), keepdims=True)
        var = jnp.var(x, axis=(0, 2, 3), keepdims=True)
        return ((x - mean) * lax.rsqrt(var + eps) * g[None, :, None, None]
                + be[None, :, None, None])

    y = bn(conv(x, params["w1"], params["b1"]), params["g1"], params["be1"])
    y = bn(conv(y, params["w2"], params["b2"]), params["g2"], params["be2"])
    return y


# ------------------------------------------ main ---------------------------------------

if __name__ == "__main__":
    key = jax.random.PRNGKey(0)
    ks = jax.random.split(key, 9)
    N, Cin, Cout, H, W = 2, 4, 8, 16, 16

    params = {
        "w1": jax.random.normal(ks[0], (Cout, Cin, 3, 3), jnp.float32) / np.sqrt(Cin * 9),
        "b1": 0.1 * jax.random.normal(ks[1], (Cout,), jnp.float32),
        "g1": 1.0 + 0.1 * jax.random.normal(ks[2], (Cout,), jnp.float32),
        "be1": 0.1 * jax.random.normal(ks[3], (Cout,), jnp.float32),
        "w2": jax.random.normal(ks[4], (Cout, Cout, 3, 3), jnp.float32) / np.sqrt(Cout * 9),
        "b2": 0.1 * jax.random.normal(ks[5], (Cout,), jnp.float32),
        "g2": 1.0 + 0.1 * jax.random.normal(ks[6], (Cout,), jnp.float32),
        "be2": 0.1 * jax.random.normal(ks[7], (Cout,), jnp.float32),
    }
    x = jax.random.normal(ks[8], (N, Cin, H, W), jnp.float32)

    out = jax.block_until_ready(jax.jit(conv_block_forward)(x, params))
    ref = jax.block_until_ready(ref_forward(x, params))
    assert out.shape == (N, Cout, H, W)
    np.testing.assert_allclose(np.asarray(out), np.asarray(ref), atol=1e-4, rtol=1e-4)
    print("KERNEL_OK")
</pallas_src>

<mosaic_0001>
module attributes {stable_mosaic.version = 11 : i64} {
  func.func @_conv_bn_stats_kernel(%arg0: i32, %arg1: memref<1x4x256xf32, #tpu.memory_space<vmem>>, %arg2: memref<9x1x256xf32, #tpu.memory_space<vmem>>, %arg3: memref<8x36xf32, #tpu.memory_space<vmem>>, %arg4: memref<1x8x256xf32, #tpu.memory_space<vmem>>, %arg5: memref<1x8x1xf32, #tpu.memory_space<vmem>>, %arg6: memref<1x8x1xf32, #tpu.memory_space<vmem>>, %arg7: memref<36x256xf32, #tpu.memory_space<vmem>>) attributes {dimension_semantics = [#tpu.dimension_semantics<parallel>], iteration_bounds = array<i64: 2>, scalar_prefetch = 0 : i64, scratch_operands = 1 : i64, tpu.core_type = #tpu.core_type<tc>, window_params = [{transform_indices = @transform_0, window_bounds = array<i64: 1, 4, 256>}, {pipeline_mode = #tpu.pipeline_mode<synchronous>, transform_indices = @transform_1, window_bounds = array<i64: 9, 1, 256>}, {pipeline_mode = #tpu.pipeline_mode<synchronous>, transform_indices = @transform_2, window_bounds = array<i64: 8, 36>}, {transform_indices = @transform_3, window_bounds = array<i64: 1, 8, 256>}, {transform_indices = @transform_4, window_bounds = array<i64: 1, 8, 1>}, {transform_indices = @transform_5, window_bounds = array<i64: 1, 8, 1>}]} {
    %c0 = arith.constant 0 : index
    %c0_0 = arith.constant 0 : index
    %c0_1 = arith.constant 0 : index
    %0 = vector.load %arg1[%c0, %c0_0, %c0_1] : memref<1x4x256xf32, #tpu.memory_space<vmem>>, vector<1x4x256xf32>
    %1 = vector.shape_cast %0 : vector<1x4x256xf32> to vector<4x256xf32>
    %c17_i32 = arith.constant 17 : i32
    %2 = tpu.dynamic_rotate %1 by %c17_i32 dim 1 : vector<4x256xf32>, i32 -> vector<4x256xf32>
    %c0_2 = arith.constant 0 : index
    %c0_3 = arith.constant 0 : index
    %c0_4 = arith.constant 0 : index
    %3 = vector.load %arg2[%c0_2, %c0_3, %c0_4] : memref<9x1x256xf32, #tpu.memory_space<vmem>>, vector<1x1x256xf32>
    %4 = vector.shape_cast %3 : vector<1x1x256xf32> to vector<1x256xf32>
    %5 = vector.broadcast %4 : vector<1x256xf32> to vector<4x256xf32>
    %6 = arith.mulf %2, %5 : vector<4x256xf32>
    %c0_5 = arith.constant 0 : index
    %c0_6 = arith.constant 0 : index
    %7 = vector.load %arg7[%c0_5, %c0_6] : memref<36x256xf32, #tpu.memory_space<vmem>>, vector<4x256xf32>
    tpu.vector_store %arg7[%c0_5, %c0_6], %6 {strides = array<i32>} : memref<36x256xf32, #tpu.memory_space<vmem>>, vector<4x256xf32>,
    %c16_i32 = arith.constant 16 : i32
    %8 = tpu.dynamic_rotate %1 by %c16_i32 dim 1 : vector<4x256xf32>, i32 -> vector<4x256xf32>
    %c1 = arith.constant 1 : index
    %c0_7 = arith.constant 0 : index
    %c0_8 = arith.constant 0 : index
    %9 = vector.load %arg2[%c1, %c0_7, %c0_8] : memref<9x1x256xf32, #tpu.memory_space<vmem>>, vector<1x1x256xf32>
    %10 = vector.shape_cast %9 : vector<1x1x256xf32> to vector<1x256xf32>
    %11 = vector.broadcast %10 : vector<1x256xf32> to vector<4x256xf32>
    %12 = arith.mulf %8, %11 : vector<4x256xf32>
    %c4 = arith.constant 4 : index
    %c0_9 = arith.constant 0 : index
    %13 = vector.load %arg7[%c4, %c0_9] : memref<36x256xf32, #tpu.memory_space<vmem>>, vector<4x256xf32>
    tpu.vector_store %arg7[%c4, %c0_9], %12 {strides = array<i32>} : memref<36x256xf32, #tpu.memory_space<vmem>>, vector<4x256xf32>,
    %c15_i32 = arith.constant 15 : i32
    %14 = tpu.dynamic_rotate %1 by %c15_i32 dim 1 : vector<4x256xf32>, i32 -> vector<4x256xf32>
    %c2 = arith.constant 2 : index
    %c0_10 = arith.constant 0 : index
    %c0_11 = arith.constant 0 : index
    %15 = vector.load %arg2[%c2, %c0_10, %c0_11] : memref<9x1x256xf32, #tpu.memory_space<vmem>>, vector<1x1x256xf32>
    %16 = vector.shape_cast %15 : vector<1x1x256xf32> to vector<1x256xf32>
    %17 = vector.broadcast %16 : vector<1x256xf32> to vector<4x256xf32>
    %18 = arith.mulf %14, %17 : vector<4x256xf32>
    %c8 = arith.constant 8 : index
    %c0_12 = arith.constant 0 : index
    %19 = vector.load %arg7[%c8, %c0_12] : memref<36x256xf32, #tpu.memory_space<vmem>>, vector<4x256xf32>
    tpu.vector_store %arg7[%c8, %c0_12], %18 {strides = array<i32>} : memref<36x256xf32, #tpu.memory_space<vmem>>, vector<4x256xf32>,
    %c1_i32 = arith.constant 1 : i32
    %20 = tpu.dynamic_rotate %1 by %c1_i32 dim 1 : vector<4x256xf32>, i32 -> vector<4x256xf32>
    %c3 = arith.constant 3 : index
    %c0_13 = arith.constant 0 : index
    %c0_14 = arith.constant 0 : index
    %21 = vector.load %arg2[%c3, %c0_13, %c0_14] : memref<9x1x256xf32, #tpu.memory_space<vmem>>, vector<1x1x256xf32>
    %22 = vector.shape_cast %21 : vector<1x1x256xf32> to vector<1x256xf32>
    %23 = vector.broadcast %22 : vector<1x256xf32> to vector<4x256xf32>
    %24 = arith.mulf %20, %23 : vector<4x256xf32>
    %c12 = arith.constant 12 : index
    %c0_15 = arith.constant 0 : index
    %25 = vector.load %arg7[%c12, %c0_15] : memref<36x256xf32, #tpu.memory_space<vmem>>, vector<4x256xf32>
    tpu.vector_store %arg7[%c12, %c0_15], %24 {strides = array<i32>} : memref<36x256xf32, #tpu.memory_space<vmem>>, vector<4x256xf32>,
    %c4_16 = arith.constant 4 : index
    %c0_17 = arith.constant 0 : index
    %c0_18 = arith.constant 0 : index
    %26 = vector.load %arg2[%c4_16, %c0_17, %c0_18] : memref<9x1x256xf32, #tpu.memory_space<vmem>>, vector<1x1x256xf32>
    %27 = vector.shape_cast %26 : vector<1x1x256xf32> to vector<1x256xf32>
    %28 = vector.broadcast %27 : vector<1x256xf32> to vector<4x256xf32>
    %29 = arith.mulf %1, %28 : vector<4x256xf32>
    %c16 = arith.constant 16 : index
    %c0_19 = arith.constant 0 : index
    %30 = vector.load %arg7[%c16, %c0_19] : memref<36x256xf32, #tpu.memory_space<vmem>>, vector<4x256xf32>
    tpu.vector_store %arg7[%c16, %c0_19], %29 {strides = array<i32>} : memref<36x256xf32, #tpu.memory_space<vmem>>, vector<4x256xf32>,
    %c255_i32 = arith.constant 255 : i32
    %31 = tpu.dynamic_rotate %1 by %c255_i32 dim 1 : vector<4x256xf32>, i32 -> vector<4x256xf32>
    %c5 = arith.constant 5 : index
    %c0_20 = arith.constant 0 : index
    %c0_21 = arith.constant 0 : index
    %32 = vector.load %arg2[%c5, %c0_20, %c0_21] : memref<9x1x256xf32, #tpu.memory_space<vmem>>, vector<1x1x256xf32>
    %33 = vector.shape_cast %32 : vector<1x1x256xf32> to vector<1x256xf32>
    %34 = vector.broadcast %33 : vector<1x256xf32> to vector<4x256xf32>
    %35 = arith.mulf %31, %34 : vector<4x256xf32>
    %c20 = arith.constant 20 : index
    %c0_22 = arith.constant 0 : index
    %36 = vector.load %arg7[%c20, %c0_22] : memref<36x256xf32, #tpu.memory_space<vmem>>, vector<4x256xf32>
    tpu.vector_store %arg7[%c20, %c0_22], %35 {strides = array<i32>} : memref<36x256xf32, #tpu.memory_space<vmem>>, vector<4x256xf32>,
    %c241_i32 = arith.constant 241 : i32
    %37 = tpu.dynamic_rotate %1 by %c241_i32 dim 1 : vector<4x256xf32>, i32 -> vector<4x256xf32>
    %c6 = arith.constant 6 : index
    %c0_23 = arith.constant 0 : index
    %c0_24 = arith.constant 0 : index
    %38 = vector.load %arg2[%c6, %c0_23, %c0_24] : memref<9x1x256xf32, #tpu.memory_space<vmem>>, vector<1x1x256xf32>
    %39 = vector.shape_cast %38 : vector<1x1x256xf32> to vector<1x256xf32>
    %40 = vector.broadcast %39 : vector<1x256xf32> to vector<4x256xf32>
    %41 = arith.mulf %37, %40 : vector<4x256xf32>
    %c24 = arith.constant 24 : index
    %c0_25 = arith.constant 0 : index
    %42 = vector.load %arg7[%c24, %c0_25] : memref<36x256xf32, #tpu.memory_space<vmem>>, vector<4x256xf32>
    tpu.vector_store %arg7[%c24, %c0_25], %41 {strides = array<i32>} : memref<36x256xf32, #tpu.memory_space<vmem>>, vector<4x256xf32>,
    %c240_i32 = arith.constant 240 : i32
    %43 = tpu.dynamic_rotate %1 by %c240_i32 dim 1 : vector<4x256xf32>, i32 -> vector<4x256xf32>
    %c7 = arith.constant 7 : index
    %c0_26 = arith.constant 0 : index
    %c0_27 = arith.constant 0 : index
    %44 = vector.load %arg2[%c7, %c0_26, %c0_27] : memref<9x1x256xf32, #tpu.memory_space<vmem>>, vector<1x1x256xf32>
    %45 = vector.shape_cast %44 : vector<1x1x256xf32> to vector<1x256xf32>
    %46 = vector.broadcast %45 : vector<1x256xf32> to vector<4x256xf32>
    %47 = arith.mulf %43, %46 : vector<4x256xf32>
    %c28 = arith.constant 28 : index
    %c0_28 = arith.constant 0 : index
    %48 = vector.load %arg7[%c28, %c0_28] : memref<36x256xf32, #tpu.memory_space<vmem>>, vector<4x256xf32>
    tpu.vector_store %arg7[%c28, %c0_28], %47 {strides = array<i32>} : memref<36x256xf32, #tpu.memory_space<vmem>>, vector<4x256xf32>,
    %c239_i32 = arith.constant 239 : i32
    %49 = tpu.dynamic_rotate %1 by %c239_i32 dim 1 : vector<4x256xf32>, i32 -> vector<4x256xf32>
    %c8_29 = arith.constant 8 : index
    %c0_30 = arith.constant 0 : index
    %c0_31 = arith.constant 0 : index
    %50 = vector.load %arg2[%c8_29, %c0_30, %c0_31] : memref<9x1x256xf32, #tpu.memory_space<vmem>>, vector<1x1x256xf32>
    %51 = vector.shape_cast %50 : vector<1x1x256xf32> to vector<1x256xf32>
    %52 = vector.broadcast %51 : vector<1x256xf32> to vector<4x256xf32>
    %53 = arith.mulf %49, %52 : vector<4x256xf32>
    %c32 = arith.constant 32 : index
    %c0_32 = arith.constant 0 : index
    %54 = vector.load %arg7[%c32, %c0_32] : memref<36x256xf32, #tpu.memory_space<vmem>>, vector<4x256xf32>
    tpu.vector_store %arg7[%c32, %c0_32], %53 {strides = array<i32>} : memref<36x256xf32, #tpu.memory_space<vmem>>, vector<4x256xf32>,
    %c0_33 = arith.constant 0 : index
    %c0_34 = arith.constant 0 : index
    %55 = vector.load %arg3[%c0_33, %c0_34] : memref<8x36xf32, #tpu.memory_space<vmem>>, vector<8x36xf32>
    %c0_35 = arith.constant 0 : index
    %c0_36 = arith.constant 0 : index
    %56 = vector.load %arg7[%c0_35, %c0_36] : memref<36x256xf32, #tpu.memory_space<vmem>>, vector<36x256xf32>
    %cst = arith.constant dense<0.000000e+00> : vector<8x256xf32>
    %57 = tpu.matmul %55, %56, %cst {dimension_numbers = #tpu.dot_dimension_numbers<[1], [0], [0], [1], [0, 0, 1, 1], [], []>} : vector<8x36xf32>, vector<36x256xf32>, vector<8x256xf32> -> vector<8x256xf32>
    %c0_37 = arith.constant 0 : index
    %c0_38 = arith.constant 0 : index
    %c0_39 = arith.constant 0 : index
    %58 = vector.load %arg4[%c0_37, %c0_38, %c0_39] : memref<1x8x256xf32, #tpu.memory_space<vmem>>, vector<1x8x256xf32>
    %59 = vector.shape_cast %58 : vector<1x8x256xf32> to vector<8x256xf32>
    %60 = vector.shape_cast %57 : vector<8x256xf32> to vector<1x8x256xf32>
    tpu.vector_store %arg4[%c0_37, %c0_38, %c0_39], %60 {strides = array<i32>} : memref<1x8x256xf32, #tpu.memory_space<vmem>>, vector<1x8x256xf32>,
    %cst_40 = arith.constant dense<0.000000e+00> : vector<8xf32>
    %61 = vector.multi_reduction <add>, %57, %cst_40 [1] : vector<8x256xf32> to vector<8xf32>
    %62 = vector.shape_cast %61 : vector<8xf32> to vector<8x1xf32>
    %cst_41 = arith.constant 3.906250e-03 : f32
    %63 = vector.broadcast %cst_41 : f32 to vector<8x1xf32>
    %64 = arith.mulf %62, %63 : vector<8x1xf32>
    %65 = vector.broadcast %64 : vector<8x1xf32> to vector<8x256xf32>
    %66 = arith.subf %57, %65 : vector<8x256xf32>
    %c0_42 = arith.constant 0 : index
    %c0_43 = arith.constant 0 : index
    %c0_44 = arith.constant 0 : index
    %67 = vector.load %arg5[%c0_42, %c0_43, %c0_44] : memref<1x8x1xf32, #tpu.memory_space<vmem>>, vector<1x8x1xf32>
    %68 = vector.shape_cast %67 : vector<1x8x1xf32> to vector<8x1xf32>
    %69 = vector.shape_cast %62 : vector<8x1xf32> to vector<1x8x1xf32>
    tpu.vector_store %arg5[%c0_42, %c0_43, %c0_44], %69 {strides = array<i32>} : memref<1x8x1xf32, #tpu.memory_space<vmem>>, vector<1x8x1xf32>,
    %70 = arith.mulf %66, %66 : vector<8x256xf32>
    %cst_45 = arith.constant dense<0.000000e+00> : vector<8xf32>
    %71 = vector.multi_reduction <add>, %70, %cst_45 [1] : vector<8x256xf32> to vector<8xf32>
    %72 = vector.shape_cast %71 : vector<8xf32> to vector<8x1xf32>
    %c0_46 = arith.constant 0 : index
    %c0_47 = arith.constant 0 : index
    %c0_48 = arith.constant 0 : index
    %73 = vector.load %arg6[%c0_46, %c0_47, %c0_48] : memref<1x8x1xf32, #tpu.memory_space<vmem>>, vector<1x8x1xf32>
    %74 = vector.shape_cast %73 : vector<1x8x1xf32> to vector<8x1xf32>
    %75 = vector.shape_cast %72 : vector<8x1xf32> to vector<1x8x1xf32>
    tpu.vector_store %arg6[%c0_46, %c0_47, %c0_48], %75 {strides = array<i32>} : memref<1x8x1xf32, #tpu.memory_space<vmem>>, vector<1x8x1xf32>,
    return
  }
  func.func @transform_0(%arg0: i32) -> (i32, i32, i32) {
    %c0_i32 = arith.constant 0 : i32
    %c0_i32_0 = arith.constant 0 : i32
    %c0_i32_1 = arith.constant 0 : i32
    return %arg0, %c0_i32, %c0_i32_0 : i32, i32, i32
  }
  func.func @transform_1(%arg0: i32) -> (i32, i32, i32) {
    %c0_i32 = arith.constant 0 : i32
    %c0_i32_0 = arith.constant 0 : i32
    %c0_i32_1 = arith.constant 0 : i32
    %c0_i32_2 = arith.constant 0 : i32
    return %c0_i32, %c0_i32_0, %c0_i32_1 : i32, i32, i32
  }
  func.func @transform_2(%arg0: i32) -> (i32, i32) {
    %c0_i32 = arith.constant 0 : i32
    %c0_i32_0 = arith.constant 0 : i32
    %c0_i32_1 = arith.constant 0 : i32
    return %c0_i32, %c0_i32_0 : i32, i32
  }
  func.func @transform_3(%arg0: i32) -> (i32, i32, i32) {
    %c0_i32 = arith.constant 0 : i32
    %c0_i32_0 = arith.constant 0 : i32
    %c0_i32_1 = arith.constant 0 : i32
    return %arg0, %c0_i32, %c0_i32_0 : i32, i32, i32
  }
  func.func @transform_4(%arg0: i32) -> (i32, i32, i32) {
    %c0_i32 = arith.constant 0 : i32
    %c0_i32_0 = arith.constant 0 : i32
    %c0_i32_1 = arith.constant 0 : i32
    return %arg0, %c0_i32, %c0_i32_0 : i32, i32, i32
  }
  func.func @transform_5(%arg0: i32) -> (i32, i32, i32) {
    %c0_i32 = arith.constant 0 : i32
    %c0_i32_0 = arith.constant 0 : i32
    %c0_i32_1 = arith.constant 0 : i32
    return %arg0, %c0_i32, %c0_i32_0 : i32, i32, i32
  }
}

module attributes {stable_mosaic.version = 11 : i64} {
  func.func @_affine_kernel(%arg0: i32, %arg1: i32, %arg2: memref<1x8x256xf32, #tpu.memory_space<vmem>>, %arg3: memref<8x1xf32, #tpu.memory_space<vmem>>, %arg4: memref<8x1xf32, #tpu.memory_space<vmem>>, %arg5: memref<1x8x256xf32, #tpu.memory_space<vmem>>) attributes {dimension_semantics = [#tpu.dimension_semantics<parallel>, #tpu.dimension_semantics<parallel>], iteration_bounds = array<i64: 2, 1>, scalar_prefetch = 0 : i64, scratch_operands = 0 : i64, tpu.core_type = #tpu.core_type<tc>, window_params = [{transform_indices = @transform_0, window_bounds = array<i64: 1, 8, 256>}, {pipeline_mode = #tpu.pipeline_mode<synchronous>, transform_indices = @transform_1, window_bounds = array<i64: 8, 1>}, {pipeline_mode = #tpu.pipeline_mode<synchronous>, transform_indices = @transform_2, window_bounds = array<i64: 8, 1>}, {transform_indices = @transform_3, window_bounds = array<i64: 1, 8, 256>}]} {
    %c0 = arith.constant 0 : index
    %c0_0 = arith.constant 0 : index
    %c0_1 = arith.constant 0 : index
    %0 = vector.load %arg2[%c0, %c0_0, %c0_1] : memref<1x8x256xf32, #tpu.memory_space<vmem>>, vector<1x8x256xf32>
    %c0_2 = arith.constant 0 : index
    %c0_3 = arith.constant 0 : index
    %1 = vector.load %arg3[%c0_2, %c0_3] : memref<8x1xf32, #tpu.memory_space<vmem>>, vector<8x1xf32>
    %2 = vector.shape_cast %1 : vector<8x1xf32> to vector<1x8x1xf32>
    %3 = vector.broadcast %2 : vector<1x8x1xf32> to vector<1x8x256xf32>
    %4 = arith.mulf %0, %3 : vector<1x8x256xf32>
    %c0_4 = arith.constant 0 : index
    %c0_5 = arith.constant 0 : index
    %5 = vector.load %arg4[%c0_4, %c0_5] : memref<8x1xf32, #tpu.memory_space<vmem>>, vector<8x1xf32>
    %6 = vector.shape_cast %5 : vector<8x1xf32> to vector<1x8x1xf32>
    %7 = vector.broadcast %6 : vector<1x8x1xf32> to vector<1x8x256xf32>
    %8 = arith.addf %4, %7 : vector<1x8x256xf32>
    %c0_6 = arith.constant 0 : index
    %c0_7 = arith.constant 0 : index
    %c0_8 = arith.constant 0 : index
    %9 = vector.load %arg5[%c0_6, %c0_7, %c0_8] : memref<1x8x256xf32, #tpu.memory_space<vmem>>, vector<1x8x256xf32>
    tpu.vector_store %arg5[%c0_6, %c0_7, %c0_8], %8 {strides = array<i32>} : memref<1x8x256xf32, #tpu.memory_space<vmem>>, vector<1x8x256xf32>,
    return
  }
  func.func @transform_0(%arg0: i32, %arg1: i32) -> (i32, i32, i32) {
    %c0_i32 = arith.constant 0 : i32
    %c0_i32_0 = arith.constant 0 : i32
    return %arg0, %c0_i32, %arg1 : i32, i32, i32
  }
  func.func @transform_1(%arg0: i32, %arg1: i32) -> (i32, i32) {
    %c0_i32 = arith.constant 0 : i32
    %c0_i32_0 = arith.constant 0 : i32
    %c0_i32_1 = arith.constant 0 : i32
    return %c0_i32, %c0_i32_0 : i32, i32
  }
  func.func @transform_2(%arg0: i32, %arg1: i32) -> (i32, i32) {
    %c0_i32 = arith.constant 0 : i32
    %c0_i32_0 = arith.constant 0 : i32
    %c0_i32_1 = arith.constant 0 : i32
    return %c0_i32, %c0_i32_0 : i32, i32
  }
  func.func @transform_3(%arg0: i32, %arg1: i32) -> (i32, i32, i32) {
    %c0_i32 = arith.constant 0 : i32
    %c0_i32_0 = arith.constant 0 : i32
    return %arg0, %c0_i32, %arg1 : i32, i32, i32
  }
}

module attributes {stable_mosaic.version = 11 : i64} {
  func.func @_conv_bn_stats_kernel(%arg0: i32, %arg1: memref<1x8x256xf32, #tpu.memory_space<vmem>>, %arg2: memref<8x1xf32, #tpu.memory_space<vmem>>, %arg3: memref<8x1xf32, #tpu.memory_space<vmem>>, %arg4: memref<9x1x256xf32, #tpu.memory_space<vmem>>, %arg5: memref<8x72xf32, #tpu.memory_space<vmem>>, %arg6: memref<1x8x256xf32, #tpu.memory_space<vmem>>, %arg7: memref<1x8x1xf32, #tpu.memory_space<vmem>>, %arg8: memref<1x8x1xf32, #tpu.memory_space<vmem>>, %arg9: memref<72x256xf32, #tpu.memory_space<vmem>>) attributes {dimension_semantics = [#tpu.dimension_semantics<parallel>], iteration_bounds = array<i64: 2>, scalar_prefetch = 0 : i64, scratch_operands = 1 : i64, tpu.core_type = #tpu.core_type<tc>, window_params = [{transform_indices = @transform_0, window_bounds = array<i64: 1, 8, 256>}, {pipeline_mode = #tpu.pipeline_mode<synchronous>, transform_indices = @transform_1, window_bounds = array<i64: 8, 1>}, {pipeline_mode = #tpu.pipeline_mode<synchronous>, transform_indices = @transform_2, window_bounds = array<i64: 8, 1>}, {pipeline_mode = #tpu.pipeline_mode<synchronous>, transform_indices = @transform_3, window_bounds = array<i64: 9, 1, 256>}, {pipeline_mode = #tpu.pipeline_mode<synchronous>, transform_indices = @transform_4, window_bounds = array<i64: 8, 72>}, {transform_indices = @transform_5, window_bounds = array<i64: 1, 8, 256>}, {transform_indices = @transform_6, window_bounds = array<i64: 1, 8, 1>}, {transform_indices = @transform_7, window_bounds = array<i64: 1, 8, 1>}]} {
    %c0 = arith.constant 0 : index
    %c0_0 = arith.constant 0 : index
    %c0_1 = arith.constant 0 : index
    %0 = vector.load %arg1[%c0, %c0_0, %c0_1] : memref<1x8x256xf32, #tpu.memory_space<vmem>>, vector<1x8x256xf32>
    %1 = vector.shape_cast %0 : vector<1x8x256xf32> to vector<8x256xf32>
    %c0_2 = arith.constant 0 : index
    %c0_3 = arith.constant 0 : index
    %2 = vector.load %arg2[%c0_2, %c0_3] : memref<8x1xf32, #tpu.memory_space<vmem>>, vector<8x1xf32>
    %3 = vector.broadcast %2 : vector<8x1xf32> to vector<8x256xf32>
    %4 = arith.mulf %1, %3 : vector<8x256xf32>
    %c0_4 = arith.constant 0 : index
    %c0_5 = arith.constant 0 : index
    %5 = vector.load %arg3[%c0_4, %c0_5] : memref<8x1xf32, #tpu.memory_space<vmem>>, vector<8x1xf32>
    %6 = vector.broadcast %5 : vector<8x1xf32> to vector<8x256xf32>
    %7 = arith.addf %4, %6 : vector<8x256xf32>
    %c17_i32 = arith.constant 17 : i32
    %8 = tpu.dynamic_rotate %7 by %c17_i32 dim 1 : vector<8x256xf32>, i32 -> vector<8x256xf32>
    %c0_6 = arith.constant 0 : index
    %c0_7 = arith.constant 0 : index
    %c0_8 = arith.constant 0 : index
    %9 = vector.load %arg4[%c0_6, %c0_7, %c0_8] : memref<9x1x256xf32, #tpu.memory_space<vmem>>, vector<1x1x256xf32>
    %10 = vector.shape_cast %9 : vector<1x1x256xf32> to vector<1x256xf32>
    %11 = vector.broadcast %10 : vector<1x256xf32> to vector<8x256xf32>
    %12 = arith.mulf %8, %11 : vector<8x256xf32>
    %c0_9 = arith.constant 0 : index
    %c0_10 = arith.constant 0 : index
    %13 = vector.load %arg9[%c0_9, %c0_10] : memref<72x256xf32, #tpu.memory_space<vmem>>, vector<8x256xf32>
    tpu.vector_store %arg9[%c0_9, %c0_10], %12 {strides = array<i32>} : memref<72x256xf32, #tpu.memory_space<vmem>>, vector<8x256xf32>,
    %c16_i32 = arith.constant 16 : i32
    %14 = tpu.dynamic_rotate %7 by %c16_i32 dim 1 : vector<8x256xf32>, i32 -> vector<8x256xf32>
    %c1 = arith.constant 1 : index
    %c0_11 = arith.constant 0 : index
    %c0_12 = arith.constant 0 : index
    %15 = vector.load %arg4[%c1, %c0_11, %c0_12] : memref<9x1x256xf32, #tpu.memory_space<vmem>>, vector<1x1x256xf32>
    %16 = vector.shape_cast %15 : vector<1x1x256xf32> to vector<1x256xf32>
    %17 = vector.broadcast %16 : vector<1x256xf32> to vector<8x256xf32>
    %18 = arith.mulf %14, %17 : vector<8x256xf32>
    %c8 = arith.constant 8 : index
    %c0_13 = arith.constant 0 : index
    %19 = vector.load %arg9[%c8, %c0_13] : memref<72x256xf32, #tpu.memory_space<vmem>>, vector<8x256xf32>
    tpu.vector_store %arg9[%c8, %c0_13], %18 {strides = array<i32>} : memref<72x256xf32, #tpu.memory_space<vmem>>, vector<8x256xf32>,
    %c15_i32 = arith.constant 15 : i32
    %20 = tpu.dynamic_rotate %7 by %c15_i32 dim 1 : vector<8x256xf32>, i32 -> vector<8x256xf32>
    %c2 = arith.constant 2 : index
    %c0_14 = arith.constant 0 : index
    %c0_15 = arith.constant 0 : index
    %21 = vector.load %arg4[%c2, %c0_14, %c0_15] : memref<9x1x256xf32, #tpu.memory_space<vmem>>, vector<1x1x256xf32>
    %22 = vector.shape_cast %21 : vector<1x1x256xf32> to vector<1x256xf32>
    %23 = vector.broadcast %22 : vector<1x256xf32> to vector<8x256xf32>
    %24 = arith.mulf %20, %23 : vector<8x256xf32>
    %c16 = arith.constant 16 : index
    %c0_16 = arith.constant 0 : index
    %25 = vector.load %arg9[%c16, %c0_16] : memref<72x256xf32, #tpu.memory_space<vmem>>, vector<8x256xf32>
    tpu.vector_store %arg9[%c16, %c0_16], %24 {strides = array<i32>} : memref<72x256xf32, #tpu.memory_space<vmem>>, vector<8x256xf32>,
    %c1_i32 = arith.constant 1 : i32
    %26 = tpu.dynamic_rotate %7 by %c1_i32 dim 1 : vector<8x256xf32>, i32 -> vector<8x256xf32>
    %c3 = arith.constant 3 : index
    %c0_17 = arith.constant 0 : index
    %c0_18 = arith.constant 0 : index
    %27 = vector.load %arg4[%c3, %c0_17, %c0_18] : memref<9x1x256xf32, #tpu.memory_space<vmem>>, vector<1x1x256xf32>
    %28 = vector.shape_cast %27 : vector<1x1x256xf32> to vector<1x256xf32>
    %29 = vector.broadcast %28 : vector<1x256xf32> to vector<8x256xf32>
    %30 = arith.mulf %26, %29 : vector<8x256xf32>
    %c24 = arith.constant 24 : index
    %c0_19 = arith.constant 0 : index
    %31 = vector.load %arg9[%c24, %c0_19] : memref<72x256xf32, #tpu.memory_space<vmem>>, vector<8x256xf32>
    tpu.vector_store %arg9[%c24, %c0_19], %30 {strides = array<i32>} : memref<72x256xf32, #tpu.memory_space<vmem>>, vector<8x256xf32>,
    %c4 = arith.constant 4 : index
    %c0_20 = arith.constant 0 : index
    %c0_21 = arith.constant 0 : index
    %32 = vector.load %arg4[%c4, %c0_20, %c0_21] : memref<9x1x256xf32, #tpu.memory_space<vmem>>, vector<1x1x256xf32>
    %33 = vector.shape_cast %32 : vector<1x1x256xf32> to vector<1x256xf32>
    %34 = vector.broadcast %33 : vector<1x256xf32> to vector<8x256xf32>
    %35 = arith.mulf %7, %34 : vector<8x256xf32>
    %c32 = arith.constant 32 : index
    %c0_22 = arith.constant 0 : index
    %36 = vector.load %arg9[%c32, %c0_22] : memref<72x256xf32, #tpu.memory_space<vmem>>, vector<8x256xf32>
    tpu.vector_store %arg9[%c32, %c0_22], %35 {strides = array<i32>} : memref<72x256xf32, #tpu.memory_space<vmem>>, vector<8x256xf32>,
    %c255_i32 = arith.constant 255 : i32
    %37 = tpu.dynamic_rotate %7 by %c255_i32 dim 1 : vector<8x256xf32>, i32 -> vector<8x256xf32>
    %c5 = arith.constant 5 : index
    %c0_23 = arith.constant 0 : index
    %c0_24 = arith.constant 0 : index
    %38 = vector.load %arg4[%c5, %c0_23, %c0_24] : memref<9x1x256xf32, #tpu.memory_space<vmem>>, vector<1x1x256xf32>
    %39 = vector.shape_cast %38 : vector<1x1x256xf32> to vector<1x256xf32>
    %40 = vector.broadcast %39 : vector<1x256xf32> to vector<8x256xf32>
    %41 = arith.mulf %37, %40 : vector<8x256xf32>
    %c40 = arith.constant 40 : index
    %c0_25 = arith.constant 0 : index
    %42 = vector.load %arg9[%c40, %c0_25] : memref<72x256xf32, #tpu.memory_space<vmem>>, vector<8x256xf32>
    tpu.vector_store %arg9[%c40, %c0_25], %41 {strides = array<i32>} : memref<72x256xf32, #tpu.memory_space<vmem>>, vector<8x256xf32>,
    %c241_i32 = arith.constant 241 : i32
    %43 = tpu.dynamic_rotate %7 by %c241_i32 dim 1 : vector<8x256xf32>, i32 -> vector<8x256xf32>
    %c6 = arith.constant 6 : index
    %c0_26 = arith.constant 0 : index
    %c0_27 = arith.constant 0 : index
    %44 = vector.load %arg4[%c6, %c0_26, %c0_27] : memref<9x1x256xf32, #tpu.memory_space<vmem>>, vector<1x1x256xf32>
    %45 = vector.shape_cast %44 : vector<1x1x256xf32> to vector<1x256xf32>
    %46 = vector.broadcast %45 : vector<1x256xf32> to vector<8x256xf32>
    %47 = arith.mulf %43, %46 : vector<8x256xf32>
    %c48 = arith.constant 48 : index
    %c0_28 = arith.constant 0 : index
    %48 = vector.load %arg9[%c48, %c0_28] : memref<72x256xf32, #tpu.memory_space<vmem>>, vector<8x256xf32>
    tpu.vector_store %arg9[%c48, %c0_28], %47 {strides = array<i32>} : memref<72x256xf32, #tpu.memory_space<vmem>>, vector<8x256xf32>,
    %c240_i32 = arith.constant 240 : i32
    %49 = tpu.dynamic_rotate %7 by %c240_i32 dim 1 : vector<8x256xf32>, i32 -> vector<8x256xf32>
    %c7 = arith.constant 7 : index
    %c0_29 = arith.constant 0 : index
    %c0_30 = arith.constant 0 : index
    %50 = vector.load %arg4[%c7, %c0_29, %c0_30] : memref<9x1x256xf32, #tpu.memory_space<vmem>>, vector<1x1x256xf32>
    %51 = vector.shape_cast %50 : vector<1x1x256xf32> to vector<1x256xf32>
    %52 = vector.broadcast %51 : vector<1x256xf32> to vector<8x256xf32>
    %53 = arith.mulf %49, %52 : vector<8x256xf32>
    %c56 = arith.constant 56 : index
    %c0_31 = arith.constant 0 : index
    %54 = vector.load %arg9[%c56, %c0_31] : memref<72x256xf32, #tpu.memory_space<vmem>>, vector<8x256xf32>
    tpu.vector_store %arg9[%c56, %c0_31], %53 {strides = array<i32>} : memref<72x256xf32, #tpu.memory_space<vmem>>, vector<8x256xf32>,
    %c239_i32 = arith.constant 239 : i32
    %55 = tpu.dynamic_rotate %7 by %c239_i32 dim 1 : vector<8x256xf32>, i32 -> vector<8x256xf32>
    %c8_32 = arith.constant 8 : index
    %c0_33 = arith.constant 0 : index
    %c0_34 = arith.constant 0 : index
    %56 = vector.load %arg4[%c8_32, %c0_33, %c0_34] : memref<9x1x256xf32, #tpu.memory_space<vmem>>, vector<1x1x256xf32>
    %57 = vector.shape_cast %56 : vector<1x1x256xf32> to vector<1x256xf32>
    %58 = vector.broadcast %57 : vector<1x256xf32> to vector<8x256xf32>
    %59 = arith.mulf %55, %58 : vector<8x256xf32>
    %c64 = arith.constant 64 : index
    %c0_35 = arith.constant 0 : index
    %60 = vector.load %arg9[%c64, %c0_35] : memref<72x256xf32, #tpu.memory_space<vmem>>, vector<8x256xf32>
    tpu.vector_store %arg9[%c64, %c0_35], %59 {strides = array<i32>} : memref<72x256xf32, #tpu.memory_space<vmem>>, vector<8x256xf32>,
    %c0_36 = arith.constant 0 : index
    %c0_37 = arith.constant 0 : index
    %61 = vector.load %arg5[%c0_36, %c0_37] : memref<8x72xf32, #tpu.memory_space<vmem>>, vector<8x72xf32>
    %c0_38 = arith.constant 0 : index
    %c0_39 = arith.constant 0 : index
    %62 = vector.load %arg9[%c0_38, %c0_39] : memref<72x256xf32, #tpu.memory_space<vmem>>, vector<72x256xf32>
    %cst = arith.constant dense<0.000000e+00> : vector<8x256xf32>
    %63 = tpu.matmul %61, %62, %cst {dimension_numbers = #tpu.dot_dimension_numbers<[1], [0], [0], [1], [0, 0, 1, 1], [], []>} : vector<8x72xf32>, vector<72x256xf32>, vector<8x256xf32> -> vector<8x256xf32>
    %c0_40 = arith.constant 0 : index
    %c0_41 = arith.constant 0 : index
    %c0_42 = arith.constant 0 : index
    %64 = vector.load %arg6[%c0_40, %c0_41, %c0_42] : memref<1x8x256xf32, #tpu.memory_space<vmem>>, vector<1x8x256xf32>
    %65 = vector.shape_cast %64 : vector<1x8x256xf32> to vector<8x256xf32>
    %66 = vector.shape_cast %63 : vector<8x256xf32> to vector<1x8x256xf32>
    tpu.vector_store %arg6[%c0_40, %c0_41, %c0_42], %66 {strides = array<i32>} : memref<1x8x256xf32, #tpu.memory_space<vmem>>, vector<1x8x256xf32>,
    %cst_43 = arith.constant dense<0.000000e+00> : vector<8xf32>
    %67 = vector.multi_reduction <add>, %63, %cst_43 [1] : vector<8x256xf32> to vector<8xf32>
    %68 = vector.shape_cast %67 : vector<8xf32> to vector<8x1xf32>
    %cst_44 = arith.constant 3.906250e-03 : f32
    %69 = vector.broadcast %cst_44 : f32 to vector<8x1xf32>
    %70 = arith.mulf %68, %69 : vector<8x1xf32>
    %71 = vector.broadcast %70 : vector<8x1xf32> to vector<8x256xf32>
    %72 = arith.subf %63, %71 : vector<8x256xf32>
    %c0_45 = arith.constant 0 : index
    %c0_46 = arith.constant 0 : index
    %c0_47 = arith.constant 0 : index
    %73 = vector.load %arg7[%c0_45, %c0_46, %c0_47] : memref<1x8x1xf32, #tpu.memory_space<vmem>>, vector<1x8x1xf32>
    %74 = vector.shape_cast %73 : vector<1x8x1xf32> to vector<8x1xf32>
    %75 = vector.shape_cast %68 : vector<8x1xf32> to vector<1x8x1xf32>
    tpu.vector_store %arg7[%c0_45, %c0_46, %c0_47], %75 {strides = array<i32>} : memref<1x8x1xf32, #tpu.memory_space<vmem>>, vector<1x8x1xf32>,
    %76 = arith.mulf %72, %72 : vector<8x256xf32>
    %cst_48 = arith.constant dense<0.000000e+00> : vector<8xf32>
    %77 = vector.multi_reduction <add>, %76, %cst_48 [1] : vector<8x256xf32> to vector<8xf32>
    %78 = vector.shape_cast %77 : vector<8xf32> to vector<8x1xf32>
    %c0_49 = arith.constant 0 : index
    %c0_50 = arith.constant 0 : index
    %c0_51 = arith.constant 0 : index
    %79 = vector.load %arg8[%c0_49, %c0_50, %c0_51] : memref<1x8x1xf32, #tpu.memory_space<vmem>>, vector<1x8x1xf32>
    %80 = vector.shape_cast %79 : vector<1x8x1xf32> to vector<8x1xf32>
    %81 = vector.shape_cast %78 : vector<8x1xf32> to vector<1x8x1xf32>
    tpu.vector_store %arg8[%c0_49, %c0_50, %c0_51], %81 {strides = array<i32>} : memref<1x8x1xf32, #tpu.memory_space<vmem>>, vector<1x8x1xf32>,
    return
  }
  func.func @transform_0(%arg0: i32) -> (i32, i32, i32) {
    %c0_i32 = arith.constant 0 : i32
    %c0_i32_0 = arith.constant 0 : i32
    %c0_i32_1 = arith.constant 0 : i32
    return %arg0, %c0_i32, %c0_i32_0 : i32, i32, i32
  }
  func.func @transform_1(%arg0: i32) -> (i32, i32) {
    %c0_i32 = arith.constant 0 : i32
    %c0_i32_0 = arith.constant 0 : i32
    %c0_i32_1 = arith.constant 0 : i32
    return %c0_i32, %c0_i32_0 : i32, i32
  }
  func.func @transform_2(%arg0: i32) -> (i32, i32) {
    %c0_i32 = arith.constant 0 : i32
    %c0_i32_0 = arith.constant 0 : i32
    %c0_i32_1 = arith.constant 0 : i32
    return %c0_i32, %c0_i32_0 : i32, i32
  }
  func.func @transform_3(%arg0: i32) -> (i32, i32, i32) {
    %c0_i32 = arith.constant 0 : i32
    %c0_i32_0 = arith.constant 0 : i32
    %c0_i32_1 = arith.constant 0 : i32
    %c0_i32_2 = arith.constant 0 : i32
    return %c0_i32, %c0_i32_0, %c0_i32_1 : i32, i32, i32
  }
  func.func @transform_4(%arg0: i32) -> (i32, i32) {
    %c0_i32 = arith.constant 0 : i32
    %c0_i32_0 = arith.constant 0 : i32
    %c0_i32_1 = arith.constant 0 : i32
    return %c0_i32, %c0_i32_0 : i32, i32
  }
  func.func @transform_5(%arg0: i32) -> (i32, i32, i32) {
    %c0_i32 = arith.constant 0 : i32
    %c0_i32_0 = arith.constant 0 : i32
    %c0_i32_1 = arith.constant 0 : i32
    return %arg0, %c0_i32, %c0_i32_0 : i32, i32, i32
  }
  func.func @transform_6(%arg0: i32) -> (i32, i32, i32) {
    %c0_i32 = arith.constant 0 : i32
    %c0_i32_0 = arith.constant 0 : i32
    %c0_i32_1 = arith.constant 0 : i32
    return %arg0, %c0_i32, %c0_i32_0 : i32, i32, i32
  }
  func.func @transform_7(%arg0: i32) -> (i32, i32, i32) {
    %c0_i32 = arith.constant 0 : i32
    %c0_i32_0 = arith.constant 0 : i32
    %c0_i32_1 = arith.constant 0 : i32
    return %arg0, %c0_i32, %c0_i32_0 : i32, i32, i32
  }
}

</mosaic_0001>

<bundles_post_ra>
// kernel: conv_block_forward.3
= control target key start
LH: loop header
LB: loop body
LE: loop exit
PB: predicated region body
PF: predicated region fallthrough
CT: control target
= control target key end

     0   :  { %s811_s18 = smov 0   ;;  %s921_s0 = inlined_call_operand.vmem [shape: f32[2,4,256], index: 0, kind: input, shape index: {}]   ;;  %s922_s1 = inlined_call_operand.vmem [shape: f32[9,1,256], index: 1, kind: input, shape index: {}]   ;;  %s923_s2 = inlined_call_operand.vmem [shape: f32[8,36], index: 2, kind: input, shape index: {}]   ;;  %s924_s3 = inlined_call_operand.vmem [shape: f32[2,8,256], index: 3, kind: output, shape index: {0}]   ;;  %s925_s4 = inlined_call_operand.vmem [shape: f32[2,8,1], index: 4, kind: output, shape index: {1}]   ;;  %s926_s5 = inlined_call_operand.vmem [shape: f32[2,8,1], index: 5, kind: output, shape index: {2}]  }
   0x1 LB: > { %s712_s19 = sadd.s32 4294967295, %s770_s18   ;;  %p716_p0 = scmp.ge.s32.totalorder %s770_s18, 1  ;;  %s770_s18 = sphi %s811_s18, %s16_s18  }
   0x2   : > { %p192_p1 = scmp.lt.s32.totalorder %s770_s18, 3 }
   0x4   : > { %p193_p2 = pnand %p716_p0, %p192_p1 }
   0x5   : > { %p228_p3 = scmp.lt.s32.totalorder (!%p193_p2), %s712_s19, 1  ;;  %v254_v0 = vlaneseq (!%p193_p2)  ;;  %v726_v5 = vld [vmem:[%s922_s1 + $0x8] sm:$0x3] (!%p193_p2)  ;;  %s772_s26 = smov (!%p193_p2), 1   ;;  %v780_v12 = vmov (!%p193_p2), 0.0   ;;  %vm501_vm8 = vcmask (!%p193_p2), 1043456  }
   0x6   : > { %196 = sbr.rel (%p193_p2) target bundleno = 683 (0x2ab), region = 32  ;;  %s773_s27 = smov (!%p193_p2), 16   ;;  %572 = vmatprep.mubr.f32.mxu0 (!%p193_p2), %v780_v12  ;;  %v725_v14 = vld [vmem:[%s922_s1 + $0x6] sm:$0x3] (!%p193_p2)  ;;  %v259_v19 = vld [vmem:[%s922_s1] sm:$0x3] (!%p193_p2) }
   0x7   : > { %v262_v1 = vshrl.u32 (!%p193_p2), %v254_v0, 7  ;;  %s774_s28 = smov (!%p193_p2), 17   ;;  %s775_s29 = smov (!%p193_p2), 15   ;;  %v837_v13 = vand.u32 (!%p193_p2), 127, %v254_v0  ;;  %v723_v20 = vld [vmem:[%s922_s1 + $0x2] sm:$0x3] (!%p193_p2) }
   0x8   : > { %s776_s30 = smov (!%p193_p2), 127   ;;  %s777_s6 = smov (!%p193_p2), 112   ;;  %v724_v27 = vld [vmem:[%s922_s1 + $0x4] sm:$0x3] (!%p193_p2)  ;;  %v727_v46 = vld [vmem:[%s922_s1 + $0xa] sm:$0x3] (!%p193_p2) }
   0x9   : > { %v828_v3 = vsub.s32 (!%p193_p2), 0, %v262_v1  ;;  %v830_v4 = vsub.s32 (!%p193_p2), 1, %v262_v1  ;;  %s778_s7 = smov (!%p193_p2), 113   ;;  %s779_s8 = smov (!%p193_p2), 111   ;;  %vm333_vm0 = vcmp.lt.s32.totalorder (!%p193_p2), %v837_v13, 1  ;;  %vm256_vm1 = vcmp.lt.s32.totalorder (!%p193_p2), %v837_v13, 17 }
   0xa   : > { %vm279_vm2 = vcmp.lt.s32.totalorder (!%p193_p2), %v837_v13, 16  ;;  %vm309_vm3 = vcmp.lt.s32.totalorder (!%p193_p2), %v837_v13, 15  ;;  %vm382_vm4 = vcmp.lt.s32.totalorder (!%p193_p2), %v837_v13, 127  ;;  %v729_v57 = vld [vmem:[%s922_s1 + $0xe] sm:$0x3] (!%p193_p2)  ;;  %vm436_vm5 = vcmp.lt.s32.totalorder (!%p193_p2), %v837_v13, 112 }
   0xb   : > { %v365_v7 = vrot.slane (!%p193_p2), %v726_v5, %v828_v3  ;;  %v369_v8 = vrot.slane (!%p193_p2), %v726_v5, %v830_v4  ;;  %v342_v17 = vrot.slane (!%p193_p2), %v725_v14, %v828_v3  ;;  %v346_v18 = vrot.slane (!%p193_p2), %v725_v14, %v830_v4 }
   0xc   : > { %v264_v25 = vrot.slane (!%p193_p2), %v259_v19, %v828_v3  ;;  %v268_v26 = vrot.slane (!%p193_p2), %v259_v19, %v830_v4  ;;  %v288_v30 = vrot.slane (!%p193_p2), %v723_v20, %v828_v3  ;;  %v292_v31 = vrot.slane (!%p193_p2), %v723_v20, %v830_v4 }
   0xd   : > { %s928_s19 = smov (!%p228_p3, %s712_s19), 1  ;;  %v370_v9 = vcombine.low %v365_v7, %v369_v8  ;;  %v318_v36 = vrot.slane %v724_v27, %v828_v3  ;;  %v322_v37 = vrot.slane %v724_v27, %v830_v4  ;;  %v391_v55 = vrot.slane %v727_v46, %v828_v3 }
   0xe   : > { %s822_s20 = sshll.u32 %s928_s19, 3  ;;  %v395_v56 = vrot.slane %v727_v46, %v830_v4  ;;  %v445_v0 = vrot.slane %v729_v57, %v828_v3  ;;  %v449_v1 = vrot.slane %v729_v57, %v830_v4  ;;  %vm412_vm6 = vcmp.lt.s32.totalorder %v837_v13, 113 }
   0xf   : > { %s232_s23 = scalar_lea.vmem %s921_s0, %s822_s20  ;;  %vm466_vm7 = vcmp.lt.s32.totalorder %v837_v13, 111  ;;  %vm497_vm9 = vcmask 293888   ;;  %s241_s11 = scalar_lea.vmem %s925_s4, %s822_s20  ;;  %vm587_vm10 = vcmask 7168  }
  0x10   : > { %v246_v2 = vld [vmem:[%s232_s23] sm:$0xff]  ;;  %s245_s13 = scalar_lea.vmem %s926_s5, %s822_s20 }
  0x11   : > { %329 = vrot.lane.b32.xlu1 %v246_v2, %s772_s26  ;;  %275 = vrot.lane.b32.xlu0 %v246_v2, %s773_s27  ;;  %v248_v6 = vcombine.high %v246_v2, %v246_v2  ;;  %v372_v10 = vmul.f32 %v370_v9, %v246_v2 }
  0x13   : > { %v374_v11 = vcombine.high %v372_v10, %v372_v10  ;;  %376 = vst [vmem:[#allocation2 + $0x20] sm:$0xf] %v372_v10 }
  0x15   : > { %250 = vrot.lane.b32.xlu0 %v246_v2, %s774_s28  ;;  %331 = vrot.lane.b32.xlu1 %v248_v6, %s772_s26  ;;  %377 = vst [vmem:[#allocation2 + $0x28] sm:$0xf] %v374_v11 }
  0x19   : > { %252 = vrot.lane.b32.xlu1 %v248_v6, %s774_s28  ;;  %277 = vrot.lane.b32.xlu0 %v248_v6, %s773_s27 }
  0x1d   : > { %307 = vrot.lane.b32.xlu1 %v248_v6, %s775_s29  ;;  %305 = vrot.lane.b32.xlu0 %v246_v2, %s775_s29 }
  0x21   : > { %380 = vrot.lane.b32.xlu1 %v248_v6, %s776_s30  ;;  %378 = vrot.lane.b32.xlu0 %v246_v2, %s776_s30  ;;  %s737_s30 = sshll.u32 %s928_s19, 4 }
  0x25   : > { %434 = vrot.lane.b32.xlu1 %v248_v6, %s777_s6  ;;  %432 = vrot.lane.b32.xlu0 %v246_v2, %s777_s6 }
  0x29   : > { %410 = vrot.lane.b32.xlu1 %v248_v6, %s778_s7  ;;  %408 = vrot.lane.b32.xlu0 %v246_v2, %s778_s7 }
  0x2d   : > { %464 = vrot.lane.b32.xlu1 %v248_v6, %s779_s8  ;;  %462 = vrot.lane.b32.xlu0 %v246_v2, %s779_s8  ;;  %v728_v2 = vld [vmem:[%s922_s1 + $0xc] sm:$0x3]  ;;  %s237_s8 = scalar_lea.vmem %s924_s3, %s737_s30 }
  0x2e   : > { %v421_v14 = vrot.slane %v728_v2, %v828_v3 }
  0x83   : > { %v330_v15 = vpop.permute.xlu1 %329  ;;  %v276_v16 = vpop.permute.xlu0 %275 }
  0x87   : > { %v251_v21 = vpop.permute.xlu0 %250  ;;  %v332_v22 = vpop.permute.xlu1 %331 }
  0x88   : > { %v334_v23 = vsel %vm333_vm0, %v330_v15, %v332_v22  ;;  %v335_v24 = vsel %vm333_vm0, %v332_v22, %v330_v15  ;;  %v425_v15 = vrot.slane %v728_v2, %v830_v4 }
  0x89   : > { %v349_v28 = vmul.f32 %v342_v17, %v335_v24  ;;  %v350_v29 = vmul.f32 %v346_v18, %v334_v23  ;;  %v730_v17 = vld [vmem:[%s922_s1 + $0x10] sm:$0x3] }
  0x8b   : > { %v353_v32 = vrot.slane %v349_v28, 4  ;;  %v354_v33 = vrot.slane %v350_v29, 4  ;;  %v253_v34 = vpop.permute.xlu1 %252  ;;  %v278_v35 = vpop.permute.xlu0 %277 }
  0x8c   : > { %v257_v38 = vsel %vm256_vm1, %v251_v21, %v253_v34  ;;  %v258_v39 = vsel %vm256_vm1, %v253_v34, %v251_v21  ;;  %v280_v40 = vsel %vm279_vm2, %v276_v16, %v278_v35  ;;  %v281_v41 = vsel %vm279_vm2, %v278_v35, %v276_v16 }
  0x8d   : > { %357 = vst [vmem:[#allocation2 + $0x10] sm:$0xf0] %v353_v32  ;;  %358 = vst [vmem:[#allocation2 + $0x18] sm:$0xf0] %v354_v33  ;;  %v271_v42 = vmul.f32 %v264_v25, %v258_v39  ;;  %v272_v43 = vmul.f32 %v268_v26, %v257_v38  ;;  %v295_v44 = vmul.f32 %v288_v30, %v281_v41 }
  0x8e   : > { %v296_v45 = vmul.f32 %v292_v31, %v280_v40  ;;  %v475_v31 = vrot.slane %v730_v17, %v828_v3  ;;  %v479_v32 = vrot.slane %v730_v17, %v830_v4 }
  0x8f   : > { %273 = vst [vmem:[#allocation2] sm:$0xf] %v271_v42  ;;  %274 = vst [vmem:[#allocation2 + $0x8] sm:$0xf] %v272_v43  ;;  %v299_v47 = vrot.slane %v295_v44, 4  ;;  %v308_v49 = vpop.permute.xlu1 %307  ;;  %v306_v50 = vpop.permute.xlu0 %305  ;;  %v486_v44 = vld [vmem:[%s923_s2] sm:$0xff] }
  0x90   : > { %v300_v48 = vrot.slane %v296_v45, 4  ;;  %v310_v51 = vsel %vm309_vm3, %v306_v50, %v308_v49  ;;  %v311_v52 = vsel %vm309_vm3, %v308_v49, %v306_v50 }
  0x91   : > { %303 = vst [vmem:[#allocation2] sm:$0xf0] %v299_v47  ;;  %v325_v53 = vmul.f32 %v318_v36, %v311_v52  ;;  %v326_v54 = vmul.f32 %v322_v37, %v310_v51 }
  0x92   : > { %304 = vst [vmem:[#allocation2 + $0x8] sm:$0xf0] %v300_v48 }
  0x93   : > { %327 = vst [vmem:[#allocation2 + $0x10] sm:$0xf] %v325_v53  ;;  %328 = vst [vmem:[#allocation2 + $0x18] sm:$0xf] %v326_v54  ;;  %v381_v58 = vpop.permute.xlu1 %380  ;;  %v379_v59 = vpop.permute.xlu0 %378 }
  0x94   : > { %v383_v60 = vsel %vm382_vm4, %v379_v59, %v381_v58  ;;  %v384_v61 = vsel %vm382_vm4, %v381_v58, %v379_v59 }
  0x95   : > { %v398_v62 = vmul.f32 %v391_v55, %v383_v60  ;;  %v399_v63 = vmul.f32 %v395_v56, %v384_v61 }
  0x97   : > { %v402_v5 = vrot.slane %v398_v62, 4  ;;  %v403_v6 = vrot.slane %v399_v63, 4  ;;  %v435_v7 = vpop.permute.xlu1 %434  ;;  %v433_v8 = vpop.permute.xlu0 %432 }
  0x98   : > { %v437_v9 = vsel %vm436_vm5, %v433_v8, %v435_v7  ;;  %v438_v10 = vsel %vm436_vm5, %v435_v7, %v433_v8  ;;  %v487_v19 = vld [vmem:[#allocation2] sm:$0xff] }
  0x99   : > { %406 = vst [vmem:[#allocation2 + $0x20] sm:$0xf0] %v402_v5  ;;  %407 = vst [vmem:[#allocation2 + $0x28] sm:$0xf0] %v403_v6  ;;  %v452_v11 = vmul.f32 %v445_v0, %v437_v9  ;;  %v453_v12 = vmul.f32 %v449_v1, %v438_v10  ;;  %v488_v16 = vld [vmem:[#allocation2 + $0x8] sm:$0xff] }
  0x9a   : > { %v490_v18 = vld [vmem:[#allocation2 + $0x18] sm:$0xff]  ;;  %v489_v20 = vld [vmem:[#allocation2 + $0x10] sm:$0xff] }
  0x9b   : > { %v456_v21 = vrot.slane %v452_v11, 4  ;;  %v457_v22 = vrot.slane %v453_v12, 4  ;;  %v411_v23 = vpop.permute.xlu1 %410  ;;  %v409_v24 = vpop.permute.xlu0 %408  ;;  %v738_v25 = vpack.c.bf16 %v490_v18, %v488_v16  ;;  %v740_v26 = vpack.c.bf16 %v489_v20, %v487_v19 }
  0x9c   : > { %v413_v27 = vsel %vm412_vm6, %v409_v24, %v411_v23  ;;  %v414_v28 = vsel %vm412_vm6, %v411_v23, %v409_v24 }
  0x9d   : > { %460 = vst [vmem:[#allocation2 + $0x30] sm:$0xf0] %v456_v21  ;;  %461 = vst [vmem:[#allocation2 + $0x38] sm:$0xf0] %v457_v22  ;;  %v428_v29 = vmul.f32 %v421_v14, %v413_v27  ;;  %v429_v30 = vmul.f32 %v425_v15, %v414_v28  ;;  %739 = vmatprep.subr.bf16.mxu0 %v738_v25 }
  0x9e   : > { %741 = vmatpush1.bf16.msra.mxu0 %v740_v26 }
  0x9f   : > { %430 = vst [vmem:[#allocation2 + $0x30] sm:$0xf] %v428_v29  ;;  %431 = vst [vmem:[#allocation2 + $0x38] sm:$0xf] %v429_v30  ;;  %v465_v33 = vpop.permute.xlu1 %464  ;;  %v463_v34 = vpop.permute.xlu0 %462 }
  0xa0   : > { %v467_v35 = vsel %vm466_vm7, %v463_v34, %v465_v33  ;;  %v468_v36 = vsel %vm466_vm7, %v465_v33, %v463_v34  ;;  %v492_v13 = vld [vmem:[#allocation2 + $0x28] sm:$0xff]  ;;  %v491_v40 = vld [vmem:[#allocation2 + $0x20] sm:$0xff] }
  0xa1   : > { %v482_v37 = vmul.f32 %v475_v31, %v467_v35  ;;  %v483_v38 = vmul.f32 %v479_v32, %v468_v36 }
  0xa3   : > { %484 = vst [vmem:[#allocation2 + $0x40] sm:$0xf] %v482_v37  ;;  %485 = vst [vmem:[#allocation2 + $0x48] sm:$0xf] %v483_v38 }
  0xa6   : > { %v494_v39 = vld [vmem:[#allocation2 + $0x38] sm:$0xff]  ;;  %v493_v41 = vld [vmem:[#allocation2 + $0x30] sm:$0xff] }
  0xa7   : > { %v742_v42 = vpack.c.bf16 %v494_v39, %v492_v13  ;;  %v744_v3 = vpack.c.bf16 %v493_v41, %v491_v40 }
  0xa9   : > { %743 = vmatprep.subr.bf16.mxu0 %v742_v42 }
  0xaa   : > { %745 = vmatpush1.bf16.msra.mxu0 %v744_v3  ;;  %v496_v4 = vld [vmem:[#allocation2 + $0x48] sm:$0xf]  ;;  %v495_v43 = vld [vmem:[#allocation2 + $0x40] sm:$0xf] }
  0xab   : > { %731 = vmatprep.subr.msk.mxu0 %vm501_vm8, %v496_v4 }
  0xae   : > { %732 = vmatpush1.msk.msra.mxu0 %vm501_vm8, %v495_v43 }
  0xaf   : > { %733 = vmatmul.mubr.msk.f32.vlgmr.msra.gmra.mrb[0].mxu0 %vm497_vm9, %v486_v44 }
 0x182   : > { %v574_v45 = vpop.f32.mrb[0].mxu0 }
 0x183   : > { %v576_v46 = vpop.f32.mrb[1].mxu0  ;;  %579 = vst [vmem:[%s237_s8] sm:$0xff] %v574_v45 }
 0x184   : > { %580 = vst [vmem:[%s237_s8 + $0x8] sm:$0xff] %v576_v46  ;;  %v581_v47 = vadd.f32 %v576_v46, %v574_v45 }
 0x186   : > { %582 = vadd.xlane.f32.xlu0 %v581_v47 }
 0x213   : > { %v583_v48 = vpop.xlane.xlu0 %582 }
 0x214   : > { %v584_v49 = vmul.f32 0.00390625, %v583_v48  ;;  %588 = vst.msk [vmem:[%s241_s11] sm:$0xff] %vm587_vm10, %v583_v48 }
 0x216   : > { %v585_v50 = vsub.f32 %v574_v45, %v584_v49  ;;  %v586_v51 = vsub.f32 %v576_v46, %v584_v49 }
 0x218   : > { %v589_v52 = vmul.f32 %v585_v50, %v585_v50  ;;  %v590_v53 = vmul.f32 %v586_v51, %v586_v51 }
 0x21a   : > { %v591_v54 = vadd.f32 %v590_v53, %v589_v52 }
 0x21c   : > { %592 = vadd.xlane.f32.xlu1 %v591_v54 }
 0x2a9   : > { %v593_v55 = vpop.xlane.xlu1 %592 }
 0x2aa   : > { %594 = vst.msk [vmem:[%s245_s13] sm:$0xff] %vm587_vm10, %v593_v55 }
 0x2ab PF: > { %s16_s18 = sadd.s32 1, %s770_s18  }
 0x2ac   : > { %p13_p4 = scmp.ge.s32.totalorder %s16_s18, 4  }
 0x2ae   :  { %15 = sbr.rel (!%p13_p4) target bundleno = 1 (0x1), region = 94 }

// kernel: conv_block_forward.5
= control target key start
LH: loop header
LB: loop body
LE: loop exit
PB: predicated region body
PF: predicated region fallthrough
CT: control target
= control target key end

     0   :  { %s401_s12 = smov 0   ;;  %s403_s13 = smov 0   ;;  %s437_s0 = inlined_call_operand.vmem [shape: f32[2,8,256], index: 0, kind: input, shape index: {}]   ;;  %s438_s1 = inlined_call_operand.vmem [shape: f32[8,1], index: 1, kind: input, shape index: {}]   ;;  %s439_s2 = inlined_call_operand.vmem [shape: f32[8,1], index: 2, kind: input, shape index: {}]   ;;  %s440_s3 = inlined_call_operand.vmem [shape: f32[2,8,256], index: 3, kind: output, shape index: {}]  }
   0x1   :  { %s405_s14 = smov 0  }
   0x2 LB: > { %s25_s15 = sadd.s32 1, %s374_s13  ;;  %p321_p0 = scmp.ge.s32.totalorder %s378_s14, 1  ;;  %s378_s14 = sphi %s405_s14, %s13_s14   ;;  %s374_s13 = sphi %s403_s13, %s442_s13   ;;  %s370_s12 = sphi %s401_s12, %s441_s12  }
   0x3   : > { %p27_p1 = scmp.ge.s32.totalorder %s25_s15, 2  ;;  %p158_p2 = scmp.lt.s32.totalorder %s378_s14, 3 }
   0x5   : > { %s444_s15 = smov (%p27_p1, %s25_s15), 0  ;;  %p159_p3 = pnand %p321_p0, %p158_p2 }
   0x6   : > { %v212_v0 = vld [vmem:[%s438_s1] sm:$0xff] (!%p159_p3)  ;;  %v380_v1 = vmov (!%p159_p3), 0   ;;  %p191_p4 = scmp.lt.s32.totalorder (!%p159_p3), %s370_s12, 1 }
   0x7   : > { %162 = sbr.rel (%p159_p3) target bundleno = 143 (0x8f), region = 32  ;;  %355 = vset.pattern.permute.xlu0 (!%p159_p3), %v380_v1  ;;  %v220_v2 = vld [vmem:[%s439_s2] sm:$0xff] (!%p159_p3) }
   0x8   : > { %215 = vperm.xlu0 (!%p159_p3), %355, %v212_v0  }
   0xc   : > { %223 = vperm.xlu0 (!%p159_p3), %355, %v220_v2  }
   0xe   : > { %s446_s12 = smov (!%p191_p4, %s370_s12), 1 }
   0xf   : > { %s328_s20 = sshll.u32 %s446_s12, 4 }
  0x10   : > { %s198_s23 = scalar_lea.vmem %s437_s0, %s328_s20  ;;  %s208_s26 = scalar_lea.vmem %s440_s3, %s328_s20 }
  0x11   : > { %v210_v4 = vld [vmem:[%s198_s23] sm:$0xff]  ;;  %v211_v5 = vld [vmem:[%s198_s23 + $0x8] sm:$0xff] }
  0x87   : > { %v216_v3 = vpop.permute.xlu0 %215 }
  0x88   : > { %v218_v6 = vmul.f32 %v216_v3, %v210_v4  ;;  %v219_v7 = vmul.f32 %v216_v3, %v211_v5 }
  0x8b   : > { %v224_v8 = vpop.permute.xlu0 %223 }
  0x8c   : > { %v226_v9 = vadd.f32 %v224_v8, %v218_v6  ;;  %v227_v10 = vadd.f32 %v224_v8, %v219_v7 }
  0x8e   : > { %228 = vst [vmem:[%s208_s26] sm:$0xff] %v226_v9  ;;  %229 = vst [vmem:[%s208_s26 + $0x8] sm:$0xff] %v227_v10 }
  0x8f PF: > { %s13_s14 = sadd.s32 1, %s378_s14   ;;  %s441_s12 = smov %s374_s13 }
  0x90   : > { %p10_p5 = scmp.ge.s32.totalorder %s13_s14, 4   ;;  %s442_s13 = smov %s444_s15 }
  0x92   :  { %12 = sbr.rel (!%p10_p5) target bundleno = 2 (0x2), region = 62 }

// kernel: conv_block_forward.4
= control target key start
LH: loop header
LB: loop body
LE: loop exit
PB: predicated region body
PF: predicated region fallthrough
CT: control target
= control target key end

     0   :  { %s872_s24 = smov 0   ;;  %s997_s0 = inlined_call_operand.vmem [shape: f32[2,8,256], index: 0, kind: input, shape index: {}]   ;;  %s998_s1 = inlined_call_operand.vmem [shape: f32[8,1], index: 1, kind: input, shape index: {}]   ;;  %s999_s2 = inlined_call_operand.vmem [shape: f32[8,1], index: 2, kind: input, shape index: {}]   ;;  %s1000_s3 = inlined_call_operand.vmem [shape: f32[9,1,256], index: 3, kind: input, shape index: {}]   ;;  %s1001_s4 = inlined_call_operand.vmem [shape: f32[8,72], index: 4, kind: input, shape index: {}]   ;;  %s1002_s5 = inlined_call_operand.vmem [shape: f32[2,8,256], index: 5, kind: output, shape index: {0}]   ;;  %s1003_s6 = inlined_call_operand.vmem [shape: f32[2,8,1], index: 6, kind: output, shape index: {1}]   ;;  %s1004_s7 = inlined_call_operand.vmem [shape: f32[2,8,1], index: 7, kind: output, shape index: {2}]  }
   0x1 LB: > { %s755_s25 = sadd.s32 4294967295, %s820_s24   ;;  %p759_p0 = scmp.ge.s32.totalorder %s820_s24, 1  ;;  %s820_s24 = sphi %s872_s24, %s18_s24  }
   0x2   : > { %p242_p1 = scmp.lt.s32.totalorder %s820_s24, 3 }
   0x4   : > { %p243_p2 = pnand %p759_p0, %p242_p1 }
   0x5   : > { %v302_v0 = vld [vmem:[%s998_s1] sm:$0xff] (!%p243_p2)  ;;  %v822_v1 = vmov (!%p243_p2), 0   ;;  %p282_p3 = scmp.lt.s32.totalorder (!%p243_p2), %s755_s25, 1  ;;  %s823_s11 = smov (!%p243_p2), 16   ;;  %v831_v11 = vmov (!%p243_p2), 0.0   ;;  %v322_v12 = vlaneseq (!%p243_p2)  ;;  %vm547_vm8 = vcmask (!%p243_p2), 588800  }
   0x6   : > { %246 = sbr.rel (%p243_p2) target bundleno = 803 (0x323), region = 40  ;;  %813 = vset.pattern.permute.xlu0 (!%p243_p2), %v822_v1  ;;  %v310_v2 = vld [vmem:[%s999_s2] sm:$0xff] (!%p243_p2)  ;;  %s824_s12 = smov (!%p243_p2), 17   ;;  %615 = vmatprep.mubr.f32.mxu0 (!%p243_p2), %v831_v11  ;;  %v769_v43 = vld [vmem:[%s1000_s3 + $0x8] sm:$0x3] (!%p243_p2)  ;;  %vm630_vm9 = vcmask (!%p243_p2), 7168  }
   0x7   : > { %305 = vperm.xlu0 (!%p243_p2), %813, %v302_v0   ;;  %s825_s13 = smov (!%p243_p2), 15   ;;  %s826_s14 = smov (!%p243_p2), 1   ;;  %v330_v13 = vshrl.u32 (!%p243_p2), %v322_v12, 7  ;;  %v914_v16 = vand.u32 (!%p243_p2), 127, %v322_v12  ;;  %v327_v17 = vld [vmem:[%s1000_s3] sm:$0x3] (!%p243_p2) }
   0x8   : > { %s827_s15 = smov (!%p243_p2), 127   ;;  %s828_s16 = smov (!%p243_p2), 113   ;;  %v766_v19 = vld [vmem:[%s1000_s3 + $0x2] sm:$0x3] (!%p243_p2)  ;;  %v767_v35 = vld [vmem:[%s1000_s3 + $0x4] sm:$0x3] (!%p243_p2) }
   0x9   : > { %s829_s17 = smov (!%p243_p2), 112   ;;  %s830_s18 = smov (!%p243_p2), 111   ;;  %v919_v18 = vsub.s32 (!%p243_p2), 0, %v330_v13  ;;  %vm324_vm0 = vcmp.lt.s32.totalorder (!%p243_p2), %v914_v16, 17  ;;  %v925_v21 = vsub.s32 (!%p243_p2), 1, %v330_v13  ;;  %vm347_vm1 = vcmp.lt.s32.totalorder (!%p243_p2), %v914_v16, 16 }
   0xa   : > { %v768_v38 = vld [vmem:[%s1000_s3 + $0x6] sm:$0x3] (!%p243_p2)  ;;  %vm371_vm2 = vcmp.lt.s32.totalorder (!%p243_p2), %v914_v16, 15  ;;  %vm395_vm3 = vcmp.lt.s32.totalorder (!%p243_p2), %v914_v16, 1  ;;  %v770_v48 = vld [vmem:[%s1000_s3 + $0xa] sm:$0x3] (!%p243_p2) }
   0xb   : > { %313 = vperm.xlu0 (!%p243_p2), %813, %v310_v2   ;;  %v332_v23 = vrot.slane (!%p243_p2), %v327_v17, %v919_v18  ;;  %v356_v24 = vrot.slane (!%p243_p2), %v766_v19, %v919_v18  ;;  %v336_v25 = vrot.slane (!%p243_p2), %v327_v17, %v925_v21  ;;  %v360_v26 = vrot.slane (!%p243_p2), %v766_v19, %v925_v21  ;;  %v772_v11 = vld [vmem:[%s1000_s3 + $0xe] sm:$0x3] (!%p243_p2) }
   0xc   : > { %v380_v42 = vrot.slane (!%p243_p2), %v767_v35, %v919_v18  ;;  %v384_v45 = vrot.slane (!%p243_p2), %v767_v35, %v925_v21  ;;  %v404_v46 = vrot.slane (!%p243_p2), %v768_v38, %v919_v18  ;;  %v408_v47 = vrot.slane (!%p243_p2), %v768_v38, %v925_v21 }
   0xd   : > { %s1006_s25 = smov (!%p282_p3, %s755_s25), 1  ;;  %vm436_vm4 = vcmp.lt.s32.totalorder %v914_v16, 127  ;;  %v425_v52 = vrot.slane %v769_v43, %v925_v21  ;;  %v421_v53 = vrot.slane %v769_v43, %v919_v18  ;;  %v445_v56 = vrot.slane %v770_v48, %v919_v18 }
   0xe   : > { %s777_s30 = sshll.u32 %s1006_s25, 4  ;;  %v449_v57 = vrot.slane %v770_v48, %v925_v21  ;;  %vm460_vm5 = vcmp.lt.s32.totalorder %v914_v16, 113  ;;  %vm484_vm6 = vcmp.lt.s32.totalorder %v914_v16, 112  ;;  %vm508_vm7 = vcmp.lt.s32.totalorder %v914_v16, 111  ;;  %s764_s22 = sshll.u32 %s1006_s25, 3 }
   0xf   : > { %s286_s10 = scalar_lea.vmem %s997_s0, %s777_s30  ;;  %s291_s21 = scalar_lea.vmem %s1002_s5, %s777_s30 }
  0x10   : > { %v300_v4 = vld [vmem:[%s286_s10] sm:$0xff]  ;;  %v301_v6 = vld [vmem:[%s286_s10 + $0x8] sm:$0xff]  ;;  %s295_s27 = scalar_lea.vmem %s1003_s6, %s764_s22  ;;  %s299_s29 = scalar_lea.vmem %s1004_s7, %s764_s22 }
  0x86   : > { %v306_v3 = vpop.permute.xlu0 %305 }
  0x87   : > { %v308_v5 = vmul.f32 %v306_v3, %v300_v4  ;;  %v309_v9 = vmul.f32 %v306_v3, %v301_v6  ;;  %v771_v6 = vld [vmem:[%s1000_s3 + $0xc] sm:$0x3] }
  0x88   : > { %v473_v19 = vrot.slane %v771_v6, %v925_v21 }
  0x8a   : > { %v314_v7 = vpop.permute.xlu0 %313 }
  0x8b   : > { %v894_v8 = vadd.f32 %v314_v7, %v308_v5  ;;  %v898_v10 = vadd.f32 %v314_v7, %v309_v9 }
  0x8d   : > { %343 = vrot.lane.b32.xlu0 %v894_v8, %s823_s11  ;;  %318 = vrot.lane.b32.xlu1 %v894_v8, %s824_s12  ;;  %v429_v7 = vmul.f32 %v425_v52, %v898_v10  ;;  %v428_v9 = vmul.f32 %v421_v53, %v894_v8 }
  0x91   : > { %367 = vrot.lane.b32.xlu0 %v894_v8, %s825_s13  ;;  %320 = vrot.lane.b32.xlu1 %v898_v10, %s824_s12 }
  0x95   : > { %391 = vrot.lane.b32.xlu0 %v894_v8, %s826_s14  ;;  %345 = vrot.lane.b32.xlu1 %v898_v10, %s823_s11 }
  0x99   : > { %432 = vrot.lane.b32.xlu0 %v894_v8, %s827_s15  ;;  %369 = vrot.lane.b32.xlu1 %v898_v10, %s825_s13 }
  0x9d   : > { %456 = vrot.lane.b32.xlu0 %v894_v8, %s828_s16  ;;  %393 = vrot.lane.b32.xlu1 %v898_v10, %s826_s14 }
  0xa1   : > { %480 = vrot.lane.b32.xlu0 %v894_v8, %s829_s17  ;;  %434 = vrot.lane.b32.xlu1 %v898_v10, %s827_s15 }
  0xa5   : > { %504 = vrot.lane.b32.xlu0 %v894_v8, %s830_s18  ;;  %458 = vrot.lane.b32.xlu1 %v898_v10, %s828_s16  ;;  %v493_v8 = vrot.slane %v772_v11, %v919_v18 }
  0xa9   : > { %482 = vrot.lane.b32.xlu1 %v898_v10, %s829_s17 }
  0xad   : > { %506 = vrot.lane.b32.xlu1 %v898_v10, %s830_s18  ;;  %v497_v10 = vrot.slane %v772_v11, %v925_v21 }
  0xff   : > { %v344_v14 = vpop.permute.xlu0 %343  ;;  %v319_v15 = vpop.permute.xlu1 %318 }
 0x103   : > { %v368_v20 = vpop.permute.xlu0 %367  ;;  %v321_v22 = vpop.permute.xlu1 %320 }
 0x104   : > { %v325_v27 = vsel %vm324_vm0, %v319_v15, %v321_v22  ;;  %v326_v28 = vsel %vm324_vm0, %v321_v22, %v319_v15  ;;  %v469_v15 = vrot.slane %v771_v6, %v919_v18 }
 0x105   : > { %v339_v33 = vmul.f32 %v332_v23, %v326_v28  ;;  %v340_v36 = vmul.f32 %v336_v25, %v325_v27 }
 0x107   : > { %v392_v29 = vpop.permute.xlu0 %391  ;;  %v346_v30 = vpop.permute.xlu1 %345 }
 0x108   : > { %v348_v31 = vsel %vm347_vm1, %v344_v14, %v346_v30  ;;  %v349_v32 = vsel %vm347_vm1, %v346_v30, %v344_v14 }
 0x109   : > { %v363_v34 = vmul.f32 %v356_v24, %v349_v32  ;;  %v364_v37 = vmul.f32 %v360_v26, %v348_v31 }
 0x10b   : > { %v370_v39 = vpop.permute.xlu1 %369  ;;  %v779_v40 = vpack.c.bf16 %v364_v37, %v340_v36  ;;  %v781_v41 = vpack.c.bf16 %v363_v34, %v339_v33  ;;  %v433_v44 = vpop.permute.xlu0 %432 }
 0x10c   : > { %v372_v49 = vsel %vm371_vm2, %v368_v20, %v370_v39  ;;  %v373_v50 = vsel %vm371_vm2, %v370_v39, %v368_v20  ;;  %v773_v20 = vld [vmem:[%s1000_s3 + $0x10] sm:$0x3] }
 0x10d   : > { %780 = vmatprep.subr.bf16.mxu0 %v779_v40  ;;  %v387_v58 = vmul.f32 %v380_v42, %v373_v50  ;;  %v388_v59 = vmul.f32 %v384_v45, %v372_v49  ;;  %v521_v27 = vrot.slane %v773_v20, %v925_v21  ;;  %v517_v36 = vrot.slane %v773_v20, %v919_v18  ;;  %v528_v21 = vld [vmem:[%s1001_s4] sm:$0xff] }
 0x10e   : > { %782 = vmatpush1.bf16.msra.mxu0 %v781_v41 }
 0x10f   : > { %v394_v51 = vpop.permute.xlu1 %393  ;;  %v457_v62 = vpop.permute.xlu0 %456 }
 0x110   : > { %v396_v54 = vsel %vm395_vm3, %v392_v29, %v394_v51  ;;  %v397_v55 = vsel %vm395_vm3, %v394_v51, %v392_v29 }
 0x111   : > { %v411_v60 = vmul.f32 %v404_v46, %v397_v55  ;;  %v412_v61 = vmul.f32 %v408_v47, %v396_v54 }
 0x113   : > { %v435_v63 = vpop.permute.xlu1 %434  ;;  %v783_v0 = vpack.c.bf16 %v412_v61, %v388_v59  ;;  %v785_v1 = vpack.c.bf16 %v411_v60, %v387_v58  ;;  %v481_v17 = vpop.permute.xlu0 %480 }
 0x114   : > { %v437_v2 = vsel %vm436_vm4, %v433_v44, %v435_v63  ;;  %v438_v3 = vsel %vm436_vm4, %v435_v63, %v433_v44 }
 0x115   : > { %v452_v4 = vmul.f32 %v445_v56, %v437_v2  ;;  %v453_v5 = vmul.f32 %v449_v57, %v438_v3  ;;  %784 = vmatprep.subr.bf16.mxu0 %v783_v0 }
 0x116   : > { %786 = vmatpush1.bf16.msra.mxu0 %v785_v1 }
 0x117   : > { %v459_v12 = vpop.permute.xlu1 %458  ;;  %v787_v13 = vpack.c.bf16 %v453_v5, %v429_v7  ;;  %v789_v14 = vpack.c.bf16 %v452_v4, %v428_v9  ;;  %v505_v32 = vpop.permute.xlu0 %504 }
 0x118   : > { %v461_v22 = vsel %vm460_vm5, %v457_v62, %v459_v12  ;;  %v462_v23 = vsel %vm460_vm5, %v459_v12, %v457_v62 }
 0x119   : > { %788 = vmatprep.subr.bf16.mxu0 %v787_v13  ;;  %v476_v28 = vmul.f32 %v469_v15, %v461_v22  ;;  %v477_v29 = vmul.f32 %v473_v19, %v462_v23 }
 0x11a   : > { %790 = vmatpush1.bf16.msra.mxu0 %v789_v14 }
 0x11b   : > { %v483_v24 = vpop.permute.xlu1 %482 }
 0x11c   : > { %v485_v25 = vsel %vm484_vm6, %v481_v17, %v483_v24  ;;  %v486_v26 = vsel %vm484_vm6, %v483_v24, %v481_v17 }
 0x11d   : > { %v500_v30 = vmul.f32 %v493_v8, %v485_v25  ;;  %v501_v31 = vmul.f32 %v497_v10, %v486_v26 }
 0x11f   : > { %v507_v33 = vpop.permute.xlu1 %506  ;;  %v791_v34 = vpack.c.bf16 %v501_v31, %v477_v29  ;;  %v793_v35 = vpack.c.bf16 %v500_v30, %v476_v28 }
 0x120   : > { %v510_v37 = vsel %vm508_vm7, %v507_v33, %v505_v32  ;;  %v509_v38 = vsel %vm508_vm7, %v505_v32, %v507_v33 }
 0x121   : > { %v525_v39 = vmul.f32 %v521_v27, %v510_v37  ;;  %792 = vmatprep.subr.bf16.mxu0 %v791_v34  ;;  %v524_v16 = vmul.f32 %v517_v36, %v509_v38 }
 0x122   : > { %794 = vmatpush1.bf16.msra.mxu0 %v793_v35 }
 0x123   : > { %567 = vmatprep.subr.mxu0 %v525_v39 }
 0x126   : > { %568 = vmatpush1.msra.mxu0 %v524_v16 }
 0x127   : > { %774 = vmatmul.mubr.msk.f32.vlgmr.msra.gmra.mrb[0].mxu0 %vm547_vm8, %v528_v21 }
 0x1fa   : > { %v617_v18 = vpop.f32.mrb[0].mxu0 }
 0x1fb   : > { %v619_v40 = vpop.f32.mrb[1].mxu0  ;;  %622 = vst [vmem:[%s291_s21] sm:$0xff] %v617_v18 }
 0x1fc   : > { %623 = vst [vmem:[%s291_s21 + $0x8] sm:$0xff] %v619_v40  ;;  %v624_v41 = vadd.f32 %v619_v40, %v617_v18 }
 0x1fe   : > { %625 = vadd.xlane.f32.xlu0 %v624_v41 }
 0x28b   : > { %v626_v42 = vpop.xlane.xlu0 %625 }
 0x28c   : > { %v627_v43 = vmul.f32 0.00390625, %v626_v42  ;;  %631 = vst.msk [vmem:[%s295_s27] sm:$0xff] %vm630_vm9, %v626_v42 }
 0x28e   : > { %v628_v44 = vsub.f32 %v617_v18, %v627_v43  ;;  %v629_v45 = vsub.f32 %v619_v40, %v627_v43 }
 0x290   : > { %v632_v46 = vmul.f32 %v628_v44, %v628_v44  ;;  %v633_v47 = vmul.f32 %v629_v45, %v629_v45 }
 0x292   : > { %v634_v48 = vadd.f32 %v633_v47, %v632_v46 }
 0x294   : > { %635 = vadd.xlane.f32.xlu1 %v634_v48 }
 0x321   : > { %v636_v49 = vpop.xlane.xlu1 %635 }
 0x322   : > { %637 = vst.msk [vmem:[%s299_s29] sm:$0xff] %vm630_vm9, %v636_v49 }
 0x323 PF: > { %s18_s24 = sadd.s32 1, %s820_s24  }
 0x324   : > { %p15_p4 = scmp.ge.s32.totalorder %s18_s24, 4  }
 0x326   :  { %17 = sbr.rel (!%p15_p4) target bundleno = 1 (0x1), region = 102 }

</bundles_post_ra>
